<compile_context>
chip_gen: v7x
topology: tpu7x:2x2x1
jax: 0.10.0
libtpu: 0.0.40
codegen_flags: <defaults>
</compile_context>

<pallas_src>
import functools

import numpy as np
import jax
import jax.numpy as jnp
from jax.experimental import pallas as pl
from jax.experimental.pallas import tpu as pltpu


# --------------------------------------------------------------------------
# Bicubic downsample operator (PULSE BicubicDownSample: stride-`factor`
# depthwise conv with a normalized bicubic kernel + replicate padding),
# expressed as two 1-D downsample matrices so the hot path is MXU matmuls.
# --------------------------------------------------------------------------
def _bicubic_weight(x, a=-0.5):
    x = abs(x)
    if x <= 1.0:
        return (a + 2.0) * x ** 3 - (a + 3.0) * x ** 2 + 1.0
    elif x < 2.0:
        return a * x ** 3 - 5.0 * a * x ** 2 + 8.0 * a * x - 4.0 * a
    return 0.0


def bicubic_downsample_matrix(in_size, factor):
    out_size = in_size // factor
    size = factor * 4
    k = np.array(
        [_bicubic_weight((i - np.floor(size / 2) + 0.5) / factor) for i in range(size)],
        dtype=np.float64,
    )
    k = k / k.sum()
    pad = (size - factor) // 2
    M = np.zeros((out_size, in_size), dtype=np.float32)
    for o in range(out_size):
        for j in range(size):
            idx = int(np.clip(o * factor - pad + j, 0, in_size - 1))  # replicate pad
            M[o, idx] += k[j]
    return jnp.asarray(M)


# --------------------------------------------------------------------------
# Generation-aware tiling / VMEM sizing
# --------------------------------------------------------------------------
_L2_BLOCK_BUDGET = 2 * 1024 * 1024   # ~2 MiB per input block -> several pipelined
                                     # grid steps on 1024^2 inputs


def _tpu_vmem_capacity():
    try:
        return int(pltpu.get_tpu_info().vmem_capacity_bytes)
    except Exception:
        return 64 * 1024 * 1024      # conservative default (v7x per-core VMEM)


def _choose_tiling(n_ch, hi, wi, itemsize):
    """Pick (channel group G, row chunk Hc).  G divides n_ch, Hc divides Hi."""
    per_ch = hi * wi * itemsize
    g = 1
    for cand in range(n_ch, 0, -1):
        if n_ch % cand == 0 and cand * per_ch <= _L2_BLOCK_BUDGET:
            g = cand
            break
    hc = hi
    if g == 1 and per_ch > _L2_BLOCK_BUDGET:
        # row-chunk a single channel; keep chunks 16-row aligned for the packed
        # bf16 scratch stores
        divs = [d for d in range(1, hi + 1)
                if hi % d == 0 and (d % 16 == 0 or d == hi)]
        fitting = [d for d in divs if d * wi * itemsize <= _L2_BLOCK_BUDGET]
        hc = max(fitting) if fitting else min(divs)
    return g, hc


def _l2_vmem_limit(g, hc, hi, wi, ho, wo, itemsize):
    cap = _tpu_vmem_capacity()
    need = (2 * g * hc * wi * itemsize      # double-buffered input blocks (f32)
            + g * hc * wi * 2               # in-kernel bf16 operand copy
            + hc * wo * (4 + 2)             # stage-1 result + bf16 cast
            + 2 * ho * g * wo * 4           # double-buffered packed ref block
            + hi * g * wo * 2               # (Hi, G*Wo) bf16 scratch
            + ho * hi * 2 + wi * wo * 2     # dh / dwt
            + ho * g * wo * 4               # stage-2 result
            + 2 * 8 * 128 * 4)              # partial-sum output blocks
    # cap at 75% of the actual chip's VMEM (64 MiB on v7x, 128 MiB on v5e/v6e)
    return int(min(int(cap * 0.75), max(32 * 1024 * 1024, 2 * need)))


# --------------------------------------------------------------------------
# Fused bicubic-downsample + L2:
#   ((D(gen_im) - ref_im)**2).mean((1,2,3)).sum()
#
# Grid = (channel groups [parallel], row chunks [arbitrary]).
# Stage 1 (per row chunk): width downsample of each channel with a tall-M bf16
# MXU matmul, packed lane-densely into a (Hi, G*Wo) bf16 scratch.
# Stage 2 (last row chunk): height downsample of the whole group with ONE dot,
# fused squared-error against the matching lane-dense ref slab, and one
# per-group partial sum is emitted (summed in the wrapper).
# --------------------------------------------------------------------------
def _down_l2_kernel(x_ref, ref_ref, dh_ref, dwt_ref, o_ref, t_scr, *,
                    g_per_blk, wo, hc, n_row_blocks):
    j = pl.program_id(1)
    row0 = pl.multiple_of(j * hc, hc)

    # Stage 1: column (width) downsample of this row chunk.  bf16 cast happens
    # here, on the block, right before the MXU matmul.
    for gidx in range(g_per_blk):                                   # static unroll
        col = jnp.dot(x_ref[gidx].astype(jnp.bfloat16), dwt_ref[...],
                      preferred_element_type=jnp.float32)           # (hc, Wo) f32
        t_scr[pl.ds(row0, hc), pl.ds(gidx * wo, wo)] = col.astype(jnp.bfloat16)

    # Stage 2 + fused L2 partial once the whole (Hi, G*Wo) intermediate for this
    # channel group is resident in VMEM.
    @pl.when(j == n_row_blocks - 1)
    def _finish():
        lr = jnp.dot(dh_ref[...], t_scr[...],
                     preferred_element_type=jnp.float32)            # (Ho, G*Wo)
        d = lr - ref_ref[0]
        o_ref[...] = jnp.zeros(o_ref.shape, jnp.float32) + jnp.sum(d * d)


def downsample_l2(gen_im, ref_packed, dh, dwt, *, g, hc, inv_n, vmem_limit):
    B, C, Hi, Wi = gen_im.shape
    Ho = dh.shape[0]
    Wo = dwt.shape[1]
    n_ch = B * C
    nb = n_ch // g
    nhc = Hi // hc

    # reshape only (no-copy view); NO wrapper-side dtype cast -> no extra HBM pass
    x = gen_im.reshape(n_ch, Hi, Wi)

    out = pl.pallas_call(
        functools.partial(_down_l2_kernel, g_per_blk=g, wo=Wo, hc=hc,
                          n_row_blocks=nhc),
        grid=(nb, nhc),
        in_specs=[
            pl.BlockSpec((g, hc, Wi), lambda i, j: (i, j, 0)),
            pl.BlockSpec((1, Ho, g * Wo), lambda i, j: (i, 0, 0)),
            pl.BlockSpec((Ho, Hi), lambda i, j: (0, 0)),
            pl.BlockSpec((Wi, Wo), lambda i, j: (0, 0)),
        ],
        # one independent partial per channel group -> channel axis can be
        # megacore-parallel; (8,128) block keeps the output lane/sublane aligned
        out_specs=pl.BlockSpec((1, 8, 128), lambda i, j: (i, 0, 0)),
        out_shape=jax.ShapeDtypeStruct((nb, 8, 128), jnp.float32),
        scratch_shapes=[pltpu.VMEM((Hi, g * Wo), jnp.bfloat16)],
        compiler_params=pltpu.CompilerParams(
            dimension_semantics=("parallel", "arbitrary"),
            vmem_limit_bytes=vmem_limit,
        ),
    )(x, ref_packed, dh, dwt)
    return out[:, 0, 0].sum() * inv_n


# --------------------------------------------------------------------------
# Fused GEOCROSS + LATENTNORM: reads `latent` once.
#   GEOCROSS uses the Gram-matrix identity
#     ||x_s - x_t||^2 = n_s + n_t - 2<x_s,x_t>
#     ||x_s + x_t||^2 = n_s + n_t + 2<x_s,x_t>
#   so the 512-dim contraction runs on the MXU and nothing of shape
#   (B, 18, 18, 512) is materialized.  When Mosaic supports atan2, the whole
#   GEOCROSS epilogue (angle, square, mean, sum) is finished in-kernel and a
#   single SMEM scalar is emitted; otherwise the tiny (B,S,S) ratio tensor is
#   finished in XLA under the same jit.
# --------------------------------------------------------------------------
@functools.lru_cache(maxsize=None)
def _kernel_atan2_supported():
    def _probe(x_ref, o_ref):
        o_ref[...] = 2.0 * jnp.arctan2(x_ref[...], x_ref[...] + 2.0)
    try:
        x = jnp.ones((8, 128), jnp.float32)
        fn = pl.pallas_call(_probe,
                            out_shape=jax.ShapeDtypeStruct((8, 128), jnp.float32))
        jax.jit(fn).lower(x).compile()
        return True
    except Exception:
        return False


def _latent_kernel(lat_ref, std_ref, out0_ref, ln_ref, *, radius, scale, fuse_atan):
    lat = lat_ref[...]                                            # (B, S, D) f32

    gram = jnp.einsum('bsd,btd->bst', lat, lat,
                      preferred_element_type=jnp.float32)         # (B, S, S)
    sq = jnp.sum(lat * lat, axis=-1)                              # (B, S)
    npair = sq[:, :, None] + sq[:, None, :]                       # (B, S, S)
    a = jnp.sqrt(jnp.maximum(npair - 2.0 * gram, 0.0) + 1e-9)
    b = jnp.sqrt(jnp.maximum(npair + 2.0 * gram, 0.0) + 1e-9)     # strictly > 0

    if fuse_atan:
        ang = 2.0 * jnp.arctan2(a, b)
        out0_ref[0, 0] = jnp.sum(ang * ang) * scale               # GEOCROSS scalar
    else:
        out0_ref[...] = a / b                                     # finished in XLA

    # LATENTNORM:  | ||leaky_relu(latent, slope=5)/std|| - radius |
    z = jnp.where(lat >= 0.0, lat, 5.0 * lat) / std_ref[...]
    ln_ref[0, 0] = jnp.abs(jnp.sqrt(jnp.sum(z * z)) - radius)


def latent_losses(latent, gaussian_std, radius, fuse_atan):
    """Returns (geocross, latentnorm) from a single fused kernel."""
    B, S, Dl = latent.shape
    std3 = gaussian_std.reshape(1, 1, Dl).astype(jnp.float32)
    scale = float(Dl) / (float(S) * float(S) * 8.0)
    kern = functools.partial(_latent_kernel, radius=float(radius),
                             scale=scale, fuse_atan=fuse_atan)

    if fuse_atan:
        geo, ln = pl.pallas_call(
            kern,
            out_shape=(jax.ShapeDtypeStruct((1, 1), jnp.float32),
                       jax.ShapeDtypeStruct((1, 1), jnp.float32)),
            out_specs=(pl.BlockSpec(memory_space=pltpu.SMEM),
                       pl.BlockSpec(memory_space=pltpu.SMEM)),
        )(latent.astype(jnp.float32), std3)
        geo = geo[0, 0]
    else:
        # TODO(synk): fallback when Mosaic can't lower atan2 in-kernel; the tiny
        # (B,S,S) ratio epilogue is finished by XLA inside the same jit.
        ratio, ln = pl.pallas_call(
            kern,
            out_shape=(jax.ShapeDtypeStruct((B, S, S), jnp.float32),
                       jax.ShapeDtypeStruct((1, 1), jnp.float32)),
            out_specs=(pl.BlockSpec(),
                       pl.BlockSpec(memory_space=pltpu.SMEM)),
        )(latent.astype(jnp.float32), std3)
        ang = 2.0 * jnp.arctan(ratio)                 # valid: b > 0, a >= 0
        geo = jnp.sum(ang * ang) * scale

    if S == 1:                                        # reference returns 0 here
        geo = jnp.float32(0.0)
    return geo, ln[0, 0]


# --------------------------------------------------------------------------
# LossBuilder port
# --------------------------------------------------------------------------
class LossBuilder:
    """JAX/Pallas port of the self-contained parts of the PyTorch LossBuilder.

    `gen_size` plays the role of the hard-coded 1024 in the reference
    (factor = gen_size // im_size) so small synthetic shapes work.
    All static setup (bicubic matrices, tiling, ref packing, jit) is hoisted
    into __init__ so every optimizer step is a single jitted dispatch.
    """

    SUPPORTED = {"L2", "GEOCROSS", "LATENTNORM"}

    def __init__(self, ref_im, loss_str, eps, gaussian_std, gen_size,
                 latent_radius=96):
        assert ref_im.shape[2] == ref_im.shape[3]
        B, C, im_size, _ = ref_im.shape
        factor = gen_size // im_size
        assert im_size * factor == gen_size

        self.eps = eps
        self.parsed_loss = [t.split("*") for t in loss_str.split("+")]
        requested = {lt for _, lt in self.parsed_loss}
        unsupported = requested - self.SUPPORTED
        if unsupported:
            # TODO(synk): ARCFACE/VGG/DISCRIMINATOR/UNIQUENESS/LPIPS need
            # pretrained nets; L1 needs initialize_laplacian state. Not ported.
            raise NotImplementedError(f"unsupported loss terms: {unsupported}")
        self.requested = requested

        self.gaussian_std = jnp.asarray(gaussian_std, jnp.float32)
        self.latent_radius = float(latent_radius)

        # ---- static L2 / downsample config (hoisted out of the hot path) ----
        Hi = Wi = gen_size
        Ho = Wo = im_size
        n_ch = B * C
        g, hc = _choose_tiling(n_ch, Hi, Wi, itemsize=4)   # gen_im assumed f32
        self._g, self._hc = g, hc
        self._nb = n_ch // g
        self._inv_n = 1.0 / float(C * Ho * Wo)
        self._vmem_limit = _l2_vmem_limit(g, hc, Hi, Wi, Ho, Wo, 4)
        self._dh = bicubic_downsample_matrix(Hi, factor).astype(jnp.bfloat16)        # (Ho, Hi)
        self._dwt = bicubic_downsample_matrix(Wi, factor).T.astype(jnp.bfloat16)     # (Wi, Wo)
        # lane-dense ref layout: (nb, Ho, G*Wo), channels packed along lanes,
        # matching the kernel's (Ho, G*Wo) low-res result.
        self._ref_packed = jnp.transpose(
            jnp.asarray(ref_im, jnp.float32).reshape(self._nb, g, Ho, Wo),
            (0, 2, 1, 3)).reshape(self._nb, Ho, g * Wo)

        # ---- latent-loss config ----
        self._geo_in_kernel = _kernel_atan2_supported()

        self._forward = jax.jit(self._forward_impl)

    def _forward_impl(self, latent, gen_im):
        values = {}
        if "L2" in self.requested:
            # gen_im_lr is only consumed by L2, so downsample and L2 are fused
            # (no HBM round trip of the low-res image).
            values["L2"] = downsample_l2(
                gen_im, self._ref_packed, self._dh, self._dwt,
                g=self._g, hc=self._hc, inv_n=self._inv_n,
                vmem_limit=self._vmem_limit)
        if self.requested & {"GEOCROSS", "LATENTNORM"}:
            geo, ln = latent_losses(latent, self.gaussian_std,
                                    self.latent_radius,
                                    fuse_atan=self._geo_in_kernel)
            values["GEOCROSS"] = geo
            values["LATENTNORM"] = ln

        loss = jnp.float32(0.0)
        losses = {}
        for weight, loss_type in self.parsed_loss:
            tmp = values[loss_type]
            losses[loss_type] = tmp
            loss = loss + float(weight) * tmp
        return loss, losses

    def forward(self, latent, gen_im):
        return self._forward(latent, gen_im)


if __name__ == "__main__":
    key = jax.random.PRNGKey(0)
    k1, k2, k3, k4 = jax.random.split(key, 4)

    B, C = 2, 3
    REF_SIZE, GEN_SIZE = 8, 16               # factor = 2 (stands in for 1024/im_size)

    ref_im = jax.random.uniform(k1, (B, C, REF_SIZE, REF_SIZE), dtype=jnp.float32)
    gen_im = jax.random.uniform(k2, (B, C, GEN_SIZE, GEN_SIZE), dtype=jnp.float32)
    latent = jax.random.normal(k3, (B, 18, 512), dtype=jnp.float32)
    # deterministic stand-in for gaussian_fit['std'] (strictly positive)
    gaussian_std = jnp.abs(jax.random.normal(k4, (512,), dtype=jnp.float32)) + 0.5

    builder = LossBuilder(
        ref_im=ref_im,
        loss_str="100*L2+0.05*GEOCROSS+1*LATENTNORM",
        eps=1e-8,
        gaussian_std=gaussian_std,
        gen_size=GEN_SIZE,
        latent_radius=96,
    )

    loss, losses = builder.forward(latent, gen_im)
    jax.block_until_ready(loss)
    for v in losses.values():
        jax.block_until_ready(v)
    print("KERNEL_OK")
</pallas_src>

<mosaic_0001>
module attributes {stable_mosaic.version = 11 : i64} {
  func.func @_down_l2_kernel(%arg0: i32, %arg1: i32, %arg2: memref<6x16x16xf32, #tpu.memory_space<vmem>>, %arg3: memref<1x8x48xf32, #tpu.memory_space<vmem>>, %arg4: memref<8x16xbf16, #tpu.memory_space<vmem>>, %arg5: memref<16x8xbf16, #tpu.memory_space<vmem>>, %arg6: memref<1x8x128xf32, #tpu.memory_space<vmem>>, %arg7: memref<16x48xbf16, #tpu.memory_space<vmem>>) attributes {dimension_semantics = [#tpu.dimension_semantics<parallel>, #tpu.dimension_semantics<arbitrary>], iteration_bounds = array<i64: 1, 1>, scalar_prefetch = 0 : i64, scratch_operands = 1 : i64, tpu.core_type = #tpu.core_type<tc>, window_params = [{transform_indices = @transform_0, window_bounds = array<i64: 6, 16, 16>}, {transform_indices = @transform_1, window_bounds = array<i64: 1, 8, 48>}, {pipeline_mode = #tpu.pipeline_mode<synchronous>, transform_indices = @transform_2, window_bounds = array<i64: 8, 16>}, {pipeline_mode = #tpu.pipeline_mode<synchronous>, transform_indices = @transform_3, window_bounds = array<i64: 16, 8>}, {transform_indices = @transform_4, window_bounds = array<i64: 1, 8, 128>}]} {
    %c16_i32 = arith.constant 16 : i32
    %0 = arith.muli %arg1, %c16_i32 : i32
    %1 = tpu.assume_multiple %0, 16 : i32
    %c0 = arith.constant 0 : index
    %c0_0 = arith.constant 0 : index
    %c0_1 = arith.constant 0 : index
    %2 = vector.load %arg2[%c0, %c0_0, %c0_1] : memref<6x16x16xf32, #tpu.memory_space<vmem>>, vector<1x16x16xf32>
    %3 = vector.shape_cast %2 : vector<1x16x16xf32> to vector<16x16xf32>
    %4 = arith.truncf %3 : vector<16x16xf32> to vector<16x16xbf16>
    %c0_2 = arith.constant 0 : index
    %c0_3 = arith.constant 0 : index
    %5 = vector.load %arg5[%c0_2, %c0_3] : memref<16x8xbf16, #tpu.memory_space<vmem>>, vector<16x8xbf16>
    %cst = arith.constant dense<0.000000e+00> : vector<16x8xf32>
    %6 = tpu.matmul %4, %5, %cst {dimension_numbers = #tpu.dot_dimension_numbers<[1], [0], [0], [1], [0, 0, 1, 1], [], []>} : vector<16x16xbf16>, vector<16x8xbf16>, vector<16x8xf32> -> vector<16x8xf32>
    %7 = arith.truncf %6 : vector<16x8xf32> to vector<16x8xbf16>
    %8 = arith.index_cast %1 : i32 to index
    %c0_4 = arith.constant 0 : index
    %9 = vector.load %arg7[%8, %c0_4] : memref<16x48xbf16, #tpu.memory_space<vmem>>, vector<16x8xbf16>
    tpu.vector_store %arg7[%8, %c0_4], %7 {strides = array<i32>} : memref<16x48xbf16, #tpu.memory_space<vmem>>, vector<16x8xbf16>,
    %c1 = arith.constant 1 : index
    %c0_5 = arith.constant 0 : index
    %c0_6 = arith.constant 0 : index
    %10 = vector.load %arg2[%c1, %c0_5, %c0_6] : memref<6x16x16xf32, #tpu.memory_space<vmem>>, vector<1x16x16xf32>
    %11 = vector.shape_cast %10 : vector<1x16x16xf32> to vector<16x16xf32>
    %12 = arith.truncf %11 : vector<16x16xf32> to vector<16x16xbf16>
    %c0_7 = arith.constant 0 : index
    %c0_8 = arith.constant 0 : index
    %13 = vector.load %arg5[%c0_7, %c0_8] : memref<16x8xbf16, #tpu.memory_space<vmem>>, vector<16x8xbf16>
    %cst_9 = arith.constant dense<0.000000e+00> : vector<16x8xf32>
    %14 = tpu.matmul %12, %13, %cst_9 {dimension_numbers = #tpu.dot_dimension_numbers<[1], [0], [0], [1], [0, 0, 1, 1], [], []>} : vector<16x16xbf16>, vector<16x8xbf16>, vector<16x8xf32> -> vector<16x8xf32>
    %15 = arith.truncf %14 : vector<16x8xf32> to vector<16x8xbf16>
    %16 = arith.index_cast %1 : i32 to index
    %c8 = arith.constant 8 : index
    %17 = vector.load %arg7[%16, %c8] : memref<16x48xbf16, #tpu.memory_space<vmem>>, vector<16x8xbf16>
    tpu.vector_store %arg7[%16, %c8], %15 {strides = array<i32>} : memref<16x48xbf16, #tpu.memory_space<vmem>>, vector<16x8xbf16>,
    %c2 = arith.constant 2 : index
    %c0_10 = arith.constant 0 : index
    %c0_11 = arith.constant 0 : index
    %18 = vector.load %arg2[%c2, %c0_10, %c0_11] : memref<6x16x16xf32, #tpu.memory_space<vmem>>, vector<1x16x16xf32>
    %19 = vector.shape_cast %18 : vector<1x16x16xf32> to vector<16x16xf32>
    %20 = arith.truncf %19 : vector<16x16xf32> to vector<16x16xbf16>
    %c0_12 = arith.constant 0 : index
    %c0_13 = arith.constant 0 : index
    %21 = vector.load %arg5[%c0_12, %c0_13] : memref<16x8xbf16, #tpu.memory_space<vmem>>, vector<16x8xbf16>
    %cst_14 = arith.constant dense<0.000000e+00> : vector<16x8xf32>
    %22 = tpu.matmul %20, %21, %cst_14 {dimension_numbers = #tpu.dot_dimension_numbers<[1], [0], [0], [1], [0, 0, 1, 1], [], []>} : vector<16x16xbf16>, vector<16x8xbf16>, vector<16x8xf32> -> vector<16x8xf32>
    %23 = arith.truncf %22 : vector<16x8xf32> to vector<16x8xbf16>
    %24 = arith.index_cast %1 : i32 to index
    %c16 = arith.constant 16 : index
    %25 = vector.load %arg7[%24, %c16] : memref<16x48xbf16, #tpu.memory_space<vmem>>, vector<16x8xbf16>
    tpu.vector_store %arg7[%24, %c16], %23 {strides = array<i32>} : memref<16x48xbf16, #tpu.memory_space<vmem>>, vector<16x8xbf16>,
    %c3 = arith.constant 3 : index
    %c0_15 = arith.constant 0 : index
    %c0_16 = arith.constant 0 : index
    %26 = vector.load %arg2[%c3, %c0_15, %c0_16] : memref<6x16x16xf32, #tpu.memory_space<vmem>>, vector<1x16x16xf32>
    %27 = vector.shape_cast %26 : vector<1x16x16xf32> to vector<16x16xf32>
    %28 = arith.truncf %27 : vector<16x16xf32> to vector<16x16xbf16>
    %c0_17 = arith.constant 0 : index
    %c0_18 = arith.constant 0 : index
    %29 = vector.load %arg5[%c0_17, %c0_18] : memref<16x8xbf16, #tpu.memory_space<vmem>>, vector<16x8xbf16>
    %cst_19 = arith.constant dense<0.000000e+00> : vector<16x8xf32>
    %30 = tpu.matmul %28, %29, %cst_19 {dimension_numbers = #tpu.dot_dimension_numbers<[1], [0], [0], [1], [0, 0, 1, 1], [], []>} : vector<16x16xbf16>, vector<16x8xbf16>, vector<16x8xf32> -> vector<16x8xf32>
    %31 = arith.truncf %30 : vector<16x8xf32> to vector<16x8xbf16>
    %32 = arith.index_cast %1 : i32 to index
    %c24 = arith.constant 24 : index
    %33 = vector.load %arg7[%32, %c24] : memref<16x48xbf16, #tpu.memory_space<vmem>>, vector<16x8xbf16>
    tpu.vector_store %arg7[%32, %c24], %31 {strides = array<i32>} : memref<16x48xbf16, #tpu.memory_space<vmem>>, vector<16x8xbf16>,
    %c4 = arith.constant 4 : index
    %c0_20 = arith.constant 0 : index
    %c0_21 = arith.constant 0 : index
    %34 = vector.load %arg2[%c4, %c0_20, %c0_21] : memref<6x16x16xf32, #tpu.memory_space<vmem>>, vector<1x16x16xf32>
    %35 = vector.shape_cast %34 : vector<1x16x16xf32> to vector<16x16xf32>
    %36 = arith.truncf %35 : vector<16x16xf32> to vector<16x16xbf16>
    %c0_22 = arith.constant 0 : index
    %c0_23 = arith.constant 0 : index
    %37 = vector.load %arg5[%c0_22, %c0_23] : memref<16x8xbf16, #tpu.memory_space<vmem>>, vector<16x8xbf16>
    %cst_24 = arith.constant dense<0.000000e+00> : vector<16x8xf32>
    %38 = tpu.matmul %36, %37, %cst_24 {dimension_numbers = #tpu.dot_dimension_numbers<[1], [0], [0], [1], [0, 0, 1, 1], [], []>} : vector<16x16xbf16>, vector<16x8xbf16>, vector<16x8xf32> -> vector<16x8xf32>
    %39 = arith.truncf %38 : vector<16x8xf32> to vector<16x8xbf16>
    %40 = arith.index_cast %1 : i32 to index
    %c32 = arith.constant 32 : index
    %41 = vector.load %arg7[%40, %c32] : memref<16x48xbf16, #tpu.memory_space<vmem>>, vector<16x8xbf16>
    tpu.vector_store %arg7[%40, %c32], %39 {strides = array<i32>} : memref<16x48xbf16, #tpu.memory_space<vmem>>, vector<16x8xbf16>,
    %c5 = arith.constant 5 : index
    %c0_25 = arith.constant 0 : index
    %c0_26 = arith.constant 0 : index
    %42 = vector.load %arg2[%c5, %c0_25, %c0_26] : memref<6x16x16xf32, #tpu.memory_space<vmem>>, vector<1x16x16xf32>
    %43 = vector.shape_cast %42 : vector<1x16x16xf32> to vector<16x16xf32>
    %44 = arith.truncf %43 : vector<16x16xf32> to vector<16x16xbf16>
    %c0_27 = arith.constant 0 : index
    %c0_28 = arith.constant 0 : index
    %45 = vector.load %arg5[%c0_27, %c0_28] : memref<16x8xbf16, #tpu.memory_space<vmem>>, vector<16x8xbf16>
    %cst_29 = arith.constant dense<0.000000e+00> : vector<16x8xf32>
    %46 = tpu.matmul %44, %45, %cst_29 {dimension_numbers = #tpu.dot_dimension_numbers<[1], [0], [0], [1], [0, 0, 1, 1], [], []>} : vector<16x16xbf16>, vector<16x8xbf16>, vector<16x8xf32> -> vector<16x8xf32>
    %47 = arith.truncf %46 : vector<16x8xf32> to vector<16x8xbf16>
    %48 = arith.index_cast %1 : i32 to index
    %c40 = arith.constant 40 : index
    %49 = vector.load %arg7[%48, %c40] : memref<16x48xbf16, #tpu.memory_space<vmem>>, vector<16x8xbf16>
    tpu.vector_store %arg7[%48, %c40], %47 {strides = array<i32>} : memref<16x48xbf16, #tpu.memory_space<vmem>>, vector<16x8xbf16>,
    %c0_i32 = arith.constant 0 : i32
    %50 = arith.cmpi eq, %arg1, %c0_i32 : i32
    %51 = arith.extui %50 : i1 to i32
    %c0_i32_30 = arith.constant 0 : i32
    %52 = arith.cmpi ne, %51, %c0_i32_30 : i32
    scf.if %52 {
      %c0_31 = arith.constant 0 : index
      %c0_32 = arith.constant 0 : index
      %53 = vector.load %arg4[%c0_31, %c0_32] : memref<8x16xbf16, #tpu.memory_space<vmem>>, vector<8x16xbf16>
      %c0_33 = arith.constant 0 : index
      %c0_34 = arith.constant 0 : index
      %54 = vector.load %arg7[%c0_33, %c0_34] : memref<16x48xbf16, #tpu.memory_space<vmem>>, vector<16x48xbf16>
      %cst_35 = arith.constant dense<0.000000e+00> : vector<8x48xf32>
      %55 = tpu.matmul %53, %54, %cst_35 {dimension_numbers = #tpu.dot_dimension_numbers<[1], [0], [0], [1], [0, 0, 1, 1], [], []>} : vector<8x16xbf16>, vector<16x48xbf16>, vector<8x48xf32> -> vector<8x48xf32>
      %c0_36 = arith.constant 0 : index
      %c0_37 = arith.constant 0 : index
      %c0_38 = arith.constant 0 : index
      %56 = vector.load %arg3[%c0_36, %c0_37, %c0_38] : memref<1x8x48xf32, #tpu.memory_space<vmem>>, vector<1x8x48xf32>
      %57 = vector.shape_cast %56 : vector<1x8x48xf32> to vector<8x48xf32>
      %58 = arith.subf %55, %57 : vector<8x48xf32>
      %cst_39 = arith.constant 0.000000e+00 : f32
      %59 = vector.broadcast %cst_39 : f32 to vector<1x8x128xf32>
      %60 = arith.mulf %58, %58 : vector<8x48xf32>
      %61 = vector.shape_cast %60 : vector<8x48xf32> to vector<1x8x48xf32>
      %cst_40 = arith.constant dense<0.000000e+00> : vector<1xf32>
      %62 = vector.multi_reduction <add>, %61, %cst_40 [1, 2] : vector<1x8x48xf32> to vector<1xf32>
      %63 = vector.shape_cast %62 : vector<1xf32> to vector<1x1x1xf32>
      %64 = vector.extract %63[0, 0, 0] : f32 from vector<1x1x1xf32>
      %65 = vector.broadcast %64 : f32 to vector<1x8x128xf32>
      %66 = arith.addf %59, %65 : vector<1x8x128xf32>
      %c0_41 = arith.constant 0 : index
      %c0_42 = arith.constant 0 : index
      %c0_43 = arith.constant 0 : index
      %67 = vector.load %arg6[%c0_41, %c0_42, %c0_43] : memref<1x8x128xf32, #tpu.memory_space<vmem>>, vector<1x8x128xf32>
      tpu.vector_store %arg6[%c0_41, %c0_42, %c0_43], %66 {strides = array<i32>} : memref<1x8x128xf32, #tpu.memory_space<vmem>>, vector<1x8x128xf32>,
    } else {
    }
    return
  }
  func.func @transform_0(%arg0: i32, %arg1: i32) -> (i32, i32, i32) {
    %c0_i32 = arith.constant 0 : i32
    %c0_i32_0 = arith.constant 0 : i32
    return %arg0, %arg1, %c0_i32 : i32, i32, i32
  }
  func.func @transform_1(%arg0: i32, %arg1: i32) -> (i32, i32, i32) {
    %c0_i32 = arith.constant 0 : i32
    %c0_i32_0 = arith.constant 0 : i32
    %c0_i32_1 = arith.constant 0 : i32
    return %arg0, %c0_i32, %c0_i32_0 : i32, i32, i32
  }
  func.func @transform_2(%arg0: i32, %arg1: i32) -> (i32, i32) {
    %c0_i32 = arith.constant 0 : i32
    %c0_i32_0 = arith.constant 0 : i32
    %c0_i32_1 = arith.constant 0 : i32
    return %c0_i32, %c0_i32_0 : i32, i32
  }
  func.func @transform_3(%arg0: i32, %arg1: i32) -> (i32, i32) {
    %c0_i32 = arith.constant 0 : i32
    %c0_i32_0 = arith.constant 0 : i32
    %c0_i32_1 = arith.constant 0 : i32
    return %c0_i32, %c0_i32_0 : i32, i32
  }
  func.func @transform_4(%arg0: i32, %arg1: i32) -> (i32, i32, i32) {
    %c0_i32 = arith.constant 0 : i32
    %c0_i32_0 = arith.constant 0 : i32
    %c0_i32_1 = arith.constant 0 : i32
    return %arg0, %c0_i32, %c0_i32_0 : i32, i32, i32
  }
}

module attributes {stable_mosaic.version = 11 : i64} {
  func.func @_latent_kernel(%arg0: memref<2x18x512xf32, #tpu.memory_space<vmem>>, %arg1: memref<1x1x512xf32, #tpu.memory_space<vmem>>, %arg2: memref<2x18x18xf32, #tpu.memory_space<vmem>>, %arg3: memref<1x1xf32, #tpu.memory_space<smem>>) attributes {dimension_semantics = [], scalar_prefetch = 0 : i64, scratch_operands = 0 : i64, tpu.core_type = #tpu.core_type<tc>} {
    %c0 = arith.constant 0 : index
    %c0_0 = arith.constant 0 : index
    %c0_1 = arith.constant 0 : index
    %0 = vector.load %arg0[%c0, %c0_0, %c0_1] : memref<2x18x512xf32, #tpu.memory_space<vmem>>, vector<2x18x512xf32>
    "tpu.trace_start"() <{level = 10 : i32, message = "bsd,btd->bst"}> : () -> ()
    %cst = arith.constant dense<0.000000e+00> : vector<2x18x18xf32>
    %1 = tpu.matmul %0, %0, %cst {dimension_numbers = #tpu.dot_dimension_numbers<[2], [2], [1], [1], [0, 0, 0, 1, 1, 1], [0], [0]>} : vector<2x18x512xf32>, vector<2x18x512xf32>, vector<2x18x18xf32> -> vector<2x18x18xf32>
    "tpu.trace_stop"() : () -> ()
    %2 = arith.mulf %0, %0 : vector<2x18x512xf32>
    %cst_2 = arith.constant dense<0.000000e+00> : vector<2x18xf32>
    %3 = vector.multi_reduction <add>, %2, %cst_2 [2] : vector<2x18x512xf32> to vector<2x18xf32>
    %4 = vector.shape_cast %3 : vector<2x18xf32> to vector<2x18x1xf32>
    %5 = vector.shape_cast %3 : vector<2x18xf32> to vector<2x1x18xf32>
    %6 = vector.broadcast %4 : vector<2x18x1xf32> to vector<2x18x18xf32>
    %7 = vector.broadcast %5 : vector<2x1x18xf32> to vector<2x18x18xf32>
    %8 = arith.addf %6, %7 : vector<2x18x18xf32>
    %cst_3 = arith.constant 2.000000e+00 : f32
    %9 = vector.broadcast %cst_3 : f32 to vector<2x18x18xf32>
    %10 = arith.mulf %9, %1 : vector<2x18x18xf32>
    %11 = arith.subf %8, %10 : vector<2x18x18xf32>
    %cst_4 = arith.constant 0.000000e+00 : f32
    %12 = vector.broadcast %cst_4 : f32 to vector<2x18x18xf32>
    %13 = arith.maximumf %11, %12 : vector<2x18x18xf32>
    %cst_5 = arith.constant 9.99999971E-10 : f32
    %14 = vector.broadcast %cst_5 : f32 to vector<2x18x18xf32>
    %15 = arith.addf %13, %14 : vector<2x18x18xf32>
    %16 = math.sqrt %15 : vector<2x18x18xf32>
    %cst_6 = arith.constant 2.000000e+00 : f32
    %17 = vector.broadcast %cst_6 : f32 to vector<2x18x18xf32>
    %18 = arith.mulf %17, %1 : vector<2x18x18xf32>
    %19 = arith.addf %8, %18 : vector<2x18x18xf32>
    %cst_7 = arith.constant 0.000000e+00 : f32
    %20 = vector.broadcast %cst_7 : f32 to vector<2x18x18xf32>
    %21 = arith.maximumf %19, %20 : vector<2x18x18xf32>
    %cst_8 = arith.constant 9.99999971E-10 : f32
    %22 = vector.broadcast %cst_8 : f32 to vector<2x18x18xf32>
    %23 = arith.addf %21, %22 : vector<2x18x18xf32>
    %24 = math.sqrt %23 : vector<2x18x18xf32>
    %25 = arith.divf %16, %24 : vector<2x18x18xf32>
    %c0_9 = arith.constant 0 : index
    %c0_10 = arith.constant 0 : index
    %c0_11 = arith.constant 0 : index
    %26 = vector.load %arg2[%c0_9, %c0_10, %c0_11] : memref<2x18x18xf32, #tpu.memory_space<vmem>>, vector<2x18x18xf32>
    tpu.vector_store %arg2[%c0_9, %c0_10, %c0_11], %25 {strides = array<i32>} : memref<2x18x18xf32, #tpu.memory_space<vmem>>, vector<2x18x18xf32>,
    %cst_12 = arith.constant 0.000000e+00 : f32
    %27 = vector.broadcast %cst_12 : f32 to vector<2x18x512xf32>
    %28 = arith.cmpf oge, %0, %27 : vector<2x18x512xf32>
    %cst_13 = arith.constant 5.000000e+00 : f32
    %29 = vector.broadcast %cst_13 : f32 to vector<2x18x512xf32>
    %30 = arith.mulf %29, %0 : vector<2x18x512xf32>
    %31 = arith.select %28, %0, %30 : vector<2x18x512xi1>, vector<2x18x512xf32>
    %c0_14 = arith.constant 0 : index
    %c0_15 = arith.constant 0 : index
    %c0_16 = arith.constant 0 : index
    %32 = vector.load %arg1[%c0_14, %c0_15, %c0_16] : memref<1x1x512xf32, #tpu.memory_space<vmem>>, vector<1x1x512xf32>
    %33 = vector.broadcast %32 : vector<1x1x512xf32> to vector<2x18x512xf32>
    %34 = arith.divf %31, %33 : vector<2x18x512xf32>
    %35 = arith.mulf %34, %34 : vector<2x18x512xf32>
    %36 = vector.shape_cast %35 : vector<2x18x512xf32> to vector<1x2x18x512xf32>
    %cst_17 = arith.constant dense<0.000000e+00> : vector<1xf32>
    %37 = vector.multi_reduction <add>, %36, %cst_17 [1, 2, 3] : vector<1x2x18x512xf32> to vector<1xf32>
    %38 = vector.shape_cast %37 : vector<1xf32> to vector<1x1x1x1xf32>
    %39 = vector.extract %38[0, 0, 0, 0] : f32 from vector<1x1x1x1xf32>
    %40 = math.sqrt %39 : f32
    %cst_18 = arith.constant 9.600000e+01 : f32
    %41 = arith.subf %40, %cst_18 : f32
    %42 = math.absf %41 : f32
    %c0_19 = arith.constant 0 : index
    %c0_20 = arith.constant 0 : index
    %43 = memref.load %arg3[%c0_19, %c0_20] : memref<1x1xf32, #tpu.memory_space<smem>>
    memref.store %42, %arg3[%c0_19, %c0_20] : memref<1x1xf32, #tpu.memory_space<smem>>
    return
  }
}

</mosaic_0001>

<bundles_post_ra>
// kernel: _forward_impl.2
= control target key start
LH: loop header
LB: loop body
LE: loop exit
PB: predicated region body
PF: predicated region fallthrough
CT: control target
= control target key end

     0   :  { %v563_v0 = vmov 0.0   ;;  %vm564_vm0 = vmmov 0   ;;  %vm30_vm1 = vcmask 130048   ;;  %vm80_vm2 = vcmask 64512   ;;  %s566_s24 = smov 16   ;;  %s567_s25 = smov 24   ;;  %s672_s3 = inlined_call_operand.vmem [shape: bf16[16,8], index: 3, kind: input, shape index: {}]   ;;  %s673_s0 = inlined_call_operand.vmem [shape: f32[6,16,16], index: 0, kind: input, shape index: {}]   ;;  %s674_s2 = inlined_call_operand.vmem [shape: bf16[8,16], index: 2, kind: input, shape index: {}]   ;;  %s675_s1 = inlined_call_operand.vmem [shape: f32[1,8,48], index: 1, kind: input, shape index: {}]   ;;  %s676_s4 = inlined_call_operand.vmem [shape: f32[1,8,128], index: 4, kind: output, shape index: {}]  }
   0x1   :  { %506 = vmatprep.subr.bf16.mxu0 %v563_v0  ;;  %512 = vmatprep.subr.bf16.mxu1 %v563_v0  ;;  %v557_v1 = vld [vmem:[%s672_s3] sm:$0xff]   ;;  %v20_v4 = vld [vmem:[%s673_s0 + $0x8] sm:$0xff]  ;;  %v471_v5 = vld [vmem:[%s673_s0 + $0x10] sm:$0xff]  ;;  %s568_s26 = smov 32   ;;  %s569_s27 = smov 40   ;;  %vm143_vm3 = vcmask 130112  }
   0x2   :  { %v558_v2 = vld [vmem:[%s672_s3] sm:$0xff]   ;;  %508 = vmatprep.mubr.msk.bf16.mxu0 %vm564_vm0, %v563_v0  ;;  %514 = vmatprep.mubr.msk.bf16.mxu1 %vm564_vm0, %v563_v0  ;;  %v472_v7 = vld [vmem:[%s673_s0 + $0x18] sm:$0xff]  ;;  %v476_v12 = vld [vmem:[%s673_s0 + $0x28] sm:$0xff]  ;;  %vm206_vm4 = vcmask 195712   ;;  %vm269_vm5 = vcmask 261312   ;;  %vm332_vm6 = vcmask 326912  }
   0x3   :  { %507 = vmatpush3.bf16.msra.mxu0 %v557_v1  ;;  %v19_v3 = vld [vmem:[%s673_s0] sm:$0xff]  ;;  %513 = vmatpush3.bf16.msra.mxu1 %v558_v2  ;;  %v85_v8 = vpack.c.bf16 %v472_v7, %v471_v5  ;;  %v479_v13 = vld [vmem:[%s673_s0 + $0x30] sm:$0xff]  ;;  %v480_v14 = vld [vmem:[%s673_s0 + $0x38] sm:$0xff]  ;;  %vm395_vm7 = vcmask 392512   ;;  %vm449_vm8 = vcmask 392192  }
   0x4   :  { %v21_v6 = vpack.c.bf16 %v20_v4, %v19_v3  ;;  %518 = vmatprep.subr.bf16.mxu0 %v563_v0  ;;  %524 = vmatprep.subr.bf16.mxu1 %v563_v0  ;;  %v559_v9 = vld [vmem:[%s672_s3] sm:$0xff]   ;;  %v211_v16 = vpack.c.bf16 %v480_v14, %v479_v13  ;;  %v484_v20 = vld [vmem:[%s673_s0 + $0x48] sm:$0xff]  ;;  %v487_v21 = vld [vmem:[%s673_s0 + $0x50] sm:$0xff] }
   0x5   :  { %v560_v10 = vld [vmem:[%s672_s3] sm:$0xff]   ;;  %v488_v22 = vld [vmem:[%s673_s0 + $0x58] sm:$0xff] }
   0x6   :  { %509 = vmatmul.mubr.msk.bf16.vlgmr.msra.gmra.mrb[0].mxu0 %vm30_vm1, %v21_v6  ;;  %v475_v11 = vld [vmem:[%s673_s0 + $0x20] sm:$0xff]  ;;  %515 = vmatmul.mubr.msk.bf16.vlgmr.msra.gmra.mrb[0].mxu1 %vm30_vm1, %v85_v8  ;;  %v337_v24 = vpack.c.bf16 %v488_v22, %v487_v21 }
   0x7   :  { %519 = vmatpush3.bf16.msra.mxu0 %v559_v9  ;;  %525 = vmatpush3.bf16.msra.mxu1 %v560_v10  ;;  %v148_v15 = vpack.c.bf16 %v476_v12, %v475_v11  ;;  %v561_v17 = vld [vmem:[%s672_s3] sm:$0xff]  }
   0x8   :  { %520 = vmatprep.mubr.msk.bf16.mxu0 %vm564_vm0, %v563_v0  ;;  %526 = vmatprep.mubr.msk.bf16.mxu1 %vm564_vm0, %v563_v0  ;;  %v562_v18 = vld [vmem:[%s672_s3] sm:$0xff]  }
   0x9   :  { %530 = vmatprep.subr.bf16.mxu0 %v563_v0  ;;  %536 = vmatprep.subr.bf16.mxu1 %v563_v0  ;;  %v483_v19 = vld [vmem:[%s673_s0 + $0x40] sm:$0xff]  ;;  %s565_s0 = smov 8  }
   0xa   :  { %v274_v23 = vpack.c.bf16 %v484_v20, %v483_v19  ;;  %v401_v61 = vld [vmem:[%s674_s2] sm:$0xf] }
   0xb   :  { %v446_v62 = vld [vmem:[%s675_s1] sm:$0xff] }
   0xe   :  { %521 = vmatmul.mubr.msk.bf16.vlgmr.msra.gmra.mrb[4].mxu0 %vm30_vm1, %v148_v15  ;;  %527 = vmatmul.mubr.msk.bf16.vlgmr.msra.gmra.mrb[4].mxu1 %vm30_vm1, %v211_v16 }
   0xf   :  { %531 = vmatpush3.bf16.msra.mxu0 %v561_v17  ;;  %537 = vmatpush3.bf16.msra.mxu1 %v562_v18 }
  0x10   :  { %532 = vmatprep.mubr.msk.bf16.mxu0 %vm564_vm0, %v563_v0  ;;  %538 = vmatprep.mubr.msk.bf16.mxu1 %vm564_vm0, %v563_v0 }
  0x11   :  { %542 = vmatprep.subr.bf16.mxu0 %v563_v0 }
  0x16   :  { %533 = vmatmul.mubr.msk.bf16.vlgmr.msra.gmra.mrb[8].mxu0 %vm30_vm1, %v274_v23  ;;  %539 = vmatmul.mubr.msk.bf16.vlgmr.msra.gmra.mrb[8].mxu1 %vm30_vm1, %v337_v24 }
  0x17   :  { %544 = vmatprep.mubr.msk.bf16.mxu0 %vm564_vm0, %v563_v0 }
  0xd9   :  { %v68_v25 = vpop.f32.mrb[0].mxu0  ;;  %v131_v26 = vpop.f32.mrb[0].mxu1 }
  0xda   :  { %v510_v27 = vpop.f32.mrb[1].mxu0  ;;  %v516_v28 = vpop.f32.mrb[1].mxu1 }
  0xdb   :  { %v71_v29 = vpop.f32.mrb[2].mxu0  ;;  %v134_v31 = vpop.f32.mrb[2].mxu1 }
  0xdc   :  { %v75_v30 = vpack.c.bf16 %v71_v29, %v68_v25  ;;  %v511_v32 = vpop.f32.mrb[3].mxu0  ;;  %v138_v33 = vpack.c.bf16 %v134_v31, %v131_v26  ;;  %v517_v34 = vpop.f32.mrb[3].mxu1 }
  0xde   :  { %81 = vst.msk [vmem:[#allocation2] sm:$0xff] %vm80_vm2, %v75_v30  ;;  %140 = vrot.lane.b32.xlu0 %v138_v33, %s565_s0 }
  0xe1   :  { %v194_v35 = vpop.f32.mrb[4].mxu0  ;;  %v257_v36 = vpop.f32.mrb[4].mxu1 }
  0xe2   :  { %v522_v37 = vpop.f32.mrb[5].mxu0  ;;  %v528_v38 = vpop.f32.mrb[5].mxu1 }
  0xe3   :  { %v197_v39 = vpop.f32.mrb[6].mxu0  ;;  %v260_v41 = vpop.f32.mrb[6].mxu1 }
  0xe4   :  { %v201_v40 = vpack.c.bf16 %v197_v39, %v194_v35  ;;  %v523_v42 = vpop.f32.mrb[7].mxu0  ;;  %v264_v43 = vpack.c.bf16 %v260_v41, %v257_v36  ;;  %v529_v44 = vpop.f32.mrb[7].mxu1 }
  0xe6   :  { %203 = vrot.lane.b32.xlu0 %v201_v40, %s566_s24  ;;  %266 = vrot.lane.b32.xlu1 %v264_v43, %s567_s25 }
  0xe9   :  { %v320_v45 = vpop.f32.mrb[8].mxu0  ;;  %v383_v46 = vpop.f32.mrb[8].mxu1 }
  0xea   :  { %v534_v47 = vpop.f32.mrb[9].mxu0  ;;  %v540_v48 = vpop.f32.mrb[9].mxu1 }
  0xeb   :  { %v323_v49 = vpop.f32.mrb[10].mxu0  ;;  %v386_v51 = vpop.f32.mrb[10].mxu1 }
  0xec   :  { %v327_v50 = vpack.c.bf16 %v323_v49, %v320_v45  ;;  %v535_v52 = vpop.f32.mrb[11].mxu0  ;;  %v390_v53 = vpack.c.bf16 %v386_v51, %v383_v46  ;;  %v541_v54 = vpop.f32.mrb[11].mxu1 }
  0xee   :  { %329 = vrot.lane.b32.xlu1 %v327_v50, %s568_s26  ;;  %392 = vrot.lane.b32.xlu0 %v390_v53, %s569_s27 }
 0x150   :  { %v141_v55 = vpop.permute.xlu0 %140 }
 0x151   :  { %144 = vst.msk [vmem:[#allocation2] sm:$0xff] %vm143_vm3, %v141_v55 }
 0x158   :  { %v204_v56 = vpop.permute.xlu0 %203  ;;  %v267_v57 = vpop.permute.xlu1 %266 }
 0x159   :  { %207 = vst.msk [vmem:[#allocation2] sm:$0xff] %vm206_vm4, %v204_v56 }
 0x15a   :  { %270 = vst.msk [vmem:[#allocation2] sm:$0xff] %vm269_vm5, %v267_v57 }
 0x160   :  { %v330_v58 = vpop.permute.xlu1 %329  ;;  %v393_v59 = vpop.permute.xlu0 %392 }
 0x161   :  { %333 = vst.msk [vmem:[#allocation2] sm:$0xff] %vm332_vm6, %v330_v58 }
 0x162   :  { %396 = vst.msk [vmem:[#allocation2] sm:$0xff] %vm395_vm7, %v393_v59 }
 0x169   :  { %v402_v60 = vld [vmem:[#allocation2] sm:$0xff] }
 0x16a   :  { %543 = vmatpush3.bf16.msra.mxu0 %v402_v60 }
 0x16d   :  { %545 = vmatmul.mubr.msk.bf16.vlgmr.msra.gmra.mrb[12].mxu0 %vm30_vm1, %v401_v61 }
 0x240   :  { %v440_v63 = vpop.f32.mrb[12].mxu0 }
 0x241   :  { %v447_v0 = vsub.f32 %v440_v63, %v446_v62  ;;  %v546_v1 = vpop.f32.mrb[13].mxu0 }
 0x242   :  { %v443_v2 = vpop.f32.mrb[14].mxu0 }
 0x243   :  { %v448_v3 = vmul.f32 %v447_v0, %v447_v0  ;;  %v547_v4 = vpop.f32.mrb[15].mxu0 }
 0x245   :  { %v450_v5 = vsel %vm449_vm8, %v448_v3, 0.0 }
 0x246   :  { %451 = vadd.xlane.f32.xlu1 %v450_v5 }
 0x2d3   :  { %v452_v6 = vpop.xlane.xlu1 %451 }
 0x2d4   :  { %v453_v7 = vrot.slane %v452_v6, 4 }
 0x2d6   :  { %v454_v8 = vadd.f32 %v453_v7, %v452_v6 }
 0x2d8   :  { %v455_v9 = vrot.slane %v454_v8, 2 }
 0x2da   :  { %v456_v10 = vadd.f32 %v455_v9, %v454_v8 }
 0x2dc   :  { %v457_v11 = vrot.slane %v456_v10, 1 }
 0x2de   :  { %v458_v12 = vadd.f32 %v457_v11, %v456_v10 }
 0x2e0   :  { %548 = vpush %v458_v12 }
 0x311   :  { %s549_s2 = spop %548 }
 0x312   :  { %v460_v13 = vstv %s549_s2 }
 0x313   :  { %462 = vst [vmem:[%s676_s4] sm:$0xff] %v460_v13 }

// kernel: _forward_impl.3
= control target key start
LH: loop header
LB: loop body
LE: loop exit
PB: predicated region body
PF: predicated region fallthrough
CT: control target
= control target key end

     0   :  { %v427_v2 = vlaneseq  ;;  %s1507_s0 = inlined_call_operand.vmem [shape: f32[2,18,512], index: 0, kind: input, shape index: {}]   ;;  %s1508_s1 = inlined_call_operand.vmem [shape: f32[1,1,512], index: 1, kind: input, shape index: {}]   ;;  %s1509_s2 = inlined_call_operand.vmem [shape: f32[2,18,18], index: 2, kind: output, shape index: {0}]   ;;  %s1510_s3 = inlined_call_operand.hbm [shape: f32[1,1], index: 3, kind: output, shape index: {1}]  }
   0x1   :  { %v967_v0 = vld [vmem:[%s1507_s0 + $0x8] sm:$0xff]  ;;  %v995_v8 = vld [vmem:[%s1507_s0] sm:$0xff]  ;;  %v1037_v21 = vld [vmem:[%s1507_s0 + $0x18] sm:$0xff] }
   0x2   :  { %v972_v1 = vld [vmem:[%s1507_s0 + $0x28] sm:$0xff]  ;;  %102 = vmatprep.mubr.f32.mxu0 %v967_v0  ;;  %v988_v6 = vshrl.u32 %v427_v2, 7  ;;  %v1000_v9 = vld [vmem:[%s1507_s0 + $0x20] sm:$0xff]  ;;  %v1042_v22 = vld [vmem:[%s1507_s0 + $0x38] sm:$0xff] }
   0x3   :  { %v852_v3 = vpack.c.bf16 %v972_v1, %v967_v0  ;;  %v979_v4 = vld [vmem:[%s1507_s0 + $0x68] sm:$0xff]  ;;  %v707_v10 = vld [vmem:[%s1508_s1] sm:$0xf]  ;;  %v854_v11 = vpack.c.bf16 %v1000_v9, %v995_v8  ;;  %v856_v23 = vpack.c.bf16 %v1042_v22, %v1037_v21  ;;  %v1049_v24 = vld [vmem:[%s1507_s0 + $0x78] sm:$0xff] }
   0x4   :  { %v984_v5 = vld [vmem:[%s1507_s0 + $0x88] sm:$0xff]  ;;  %262 = vmatprep.mubr.f32.mxu1 %v979_v4  ;;  %v1011_v12 = vld [vmem:[%s1507_s0 + $0x60] sm:$0xff]  ;;  %v715_v14 = vsub.s32 1, %v988_v6  ;;  %v711_v15 = vsub.s32 0, %v988_v6  ;;  %v1054_v25 = vld [vmem:[%s1507_s0 + $0x98] sm:$0xff] }
   0x5   :  { %v860_v7 = vpack.c.bf16 %v984_v5, %v979_v4  ;;  %853 = vmatprep.subr.bf16.mxu0 %v852_v3  ;;  %v1016_v13 = vld [vmem:[%s1507_s0 + $0x80] sm:$0xff]  ;;  %v1023_v16 = vld [vmem:[%s1507_s0 + $0x48] sm:$0x3] }
   0x6   :  { %855 = vmatpush1.bf16.xpose.msra.mxu0 %v854_v11  ;;  %v716_v17 = vrot.slane %v707_v10, %v715_v14  ;;  %v862_v18 = vpack.c.bf16 %v1016_v13, %v1011_v12  ;;  %v1031_v19 = vld [vmem:[%s1507_s0 + $0xa8] sm:$0x3]  ;;  %v712_v20 = vrot.slane %v707_v10, %v711_v15 }
   0x7   :  { %861 = vmatprep.subr.bf16.mxu1 %v860_v7  ;;  %42 = vmatprep.subr.mxu0 %v1023_v16 }
   0x8   :  { %885 = vrcp.f32 %v716_v17  ;;  %863 = vmatpush1.bf16.xpose.msra.mxu1 %v862_v18 }
   0x9   :  { %887 = vrcp.f32 %v712_v20  ;;  %202 = vmatprep.subr.mxu1 %v1031_v19 }
   0xa   :  { %9 = vsyncpa [#allocation3], 0  ;;  %v723_v26 = vsub.s32 3, %v988_v6  ;;  %v1060_v27 = vld [vmem:[%s1507_s0 + $0x40] sm:$0x3]  ;;  %v1065_v28 = vld [vmem:[%s1507_s0 + $0x10] sm:$0xff]  ;;  %v864_v32 = vpack.c.bf16 %v1054_v25, %v1049_v24 }
   0xb   :  { %v1070_v29 = vld [vmem:[%s1507_s0 + $0x30] sm:$0xff]  ;;  %v1076_v30 = vld [vmem:[%s1507_s0 + $0xa0] sm:$0x3]  ;;  %v660_v36 = vmul.f32 5.0, %v967_v0  ;;  %v659_v37 = vmul.f32 5.0, %v995_v8  ;;  %v719_v38 = vsub.s32 2, %v988_v6 }
   0xc   :  { %v724_v31 = vrot.slane %v707_v10, %v723_v26  ;;  %v858_v33 = vpack.c.bf16 %v1070_v29, %v1065_v28  ;;  %v1085_v34 = vld [vmem:[%s1507_s0 + $0x70] sm:$0xff]  ;;  %vm636_vm0 = vcmp.ge.f32.partialorder %v967_v0, 0.0  ;;  %vm635_vm1 = vcmp.ge.f32.partialorder %v995_v8, 0.0  ;;  %v1105_v42 = vld [vmem:[%s1507_s0 + $0x58] sm:$0x3]  ;;  %s931_s23 = scalar_lea.hbm %s1510_s3, 16 }
   0xd   :  { %v1090_v35 = vld [vmem:[%s1507_s0 + $0x90] sm:$0xff]  ;;  %v720_v39 = vrot.slane %v707_v10, %v719_v38  ;;  %v664_v41 = vmul.f32 5.0, %v972_v1  ;;  %v684_v44 = vsel %vm636_vm0, %v967_v0, %v660_v36  ;;  %v672_v45 = vmul.f32 5.0, %v979_v4  ;;  %v1133_v54 = vld [vmem:[%s1507_s0 + $0xb8] sm:$0x3]  ;;  %p932_p0 = scmp.ne.s32.totalorder %s1510_s3, %s931_s23  ;;  %p935_p1 = scmp.lt.u32.totalorder %s931_s23, %s1510_s3 }
   0xe   :  { %43 = vmatpush1.xpose.msra.mxu0 %v1060_v27  ;;  %889 = vrcp.f32 %v724_v31  ;;  %v866_v40 = vpack.c.bf16 %v1090_v35, %v1085_v34  ;;  %v683_v46 = vsel %vm635_vm1, %v995_v8, %v659_v37  ;;  %vm640_vm2 = vcmp.ge.f32.partialorder %v972_v1, 0.0  ;;  %v1146_v58 = vld [vmem:[%s1507_s0 + $0x50] sm:$0x3] }
   0xf   :  { %857 = vmatprep.subr.bf16.mxu0 %v856_v23  ;;  %891 = vrcp.f32 %v720_v39  ;;  %vm648_vm3 = vcmp.ge.f32.partialorder %v979_v4, 0.0  ;;  %vm639_vm4 = vcmp.ge.f32.partialorder %v1000_v9, 0.0  ;;  %v663_v48 = vmul.f32 5.0, %v1000_v9  ;;  %v1176_v15 = vld [vmem:[%s1507_s0 + $0xb0] sm:$0x3]  ;;  %p937_p2 = pnand %p935_p1, %p932_p0 }
  0x10   :  { %203 = vmatpush1.xpose.msra.mxu1 %v1076_v30  ;;  %vm644_vm5 = vcmp.ge.f32.partialorder %v1023_v16, 0.0  ;;  %v668_v49 = vmul.f32 5.0, %v1023_v16  ;;  %v667_v50 = vmul.f32 5.0, %v1060_v27  ;;  %v662_v51 = vmul.f32 5.0, %v1037_v21 }
  0x11   :  { %103 = vmatmul.mubr.f32.vlgmr.msra.gmra.mrb[0].mxu0 %v995_v8  ;;  %865 = vmatprep.subr.bf16.mxu1 %v864_v32  ;;  %vm643_vm6 = vcmp.ge.f32.partialorder %v1060_v27, 0.0  ;;  %vm638_vm7 = vcmp.ge.f32.partialorder %v1037_v21, 0.0  ;;  %v688_v55 = vsel %vm640_vm2, %v972_v1, %v664_v41  ;;  %v696_v56 = vsel %vm648_vm3, %v979_v4, %v672_v45 }
  0x12   :  { %859 = vmatpush1.bf16.xpose.msra.mxu0 %v858_v33  ;;  %v1107_v43 = vpop.eup %885  ;;  %107 = vmatprep.mubr.f32.mxu0 %v972_v1  ;;  %v661_v57 = vmul.f32 5.0, %v1065_v28  ;;  %v687_v59 = vsel %vm639_vm4, %v1000_v9, %v663_v48  ;;  %vm647_vm8 = vcmp.ge.f32.partialorder %v1011_v12, 0.0  ;;  %v671_v60 = vmul.f32 5.0, %v1011_v12 }
  0x13   :  { %122 = vmatprep.subr.mxu0 %v1105_v42  ;;  %v1114_v47 = vpop.eup %887  ;;  %263 = vmatmul.mubr.f32.vlgmr.msra.gmra.mrb[0].mxu1 %v1011_v12  ;;  %v732_v52 = vmul.f32 %v1107_v43, %v684_v44  ;;  %vm637_vm9 = vcmp.ge.f32.partialorder %v1065_v28, 0.0  ;;  %v692_v61 = vsel %vm644_vm5, %v1023_v16, %v668_v49  ;;  %v691_v62 = vsel %vm643_vm6, %v1060_v27, %v667_v50 }
  0x14   :  { %867 = vmatpush1.bf16.xpose.msra.mxu1 %v866_v40  ;;  %v730_v53 = vmul.f32 %v1114_v47, %v683_v46  ;;  %267 = vmatprep.mubr.f32.mxu1 %v984_v5  ;;  %v686_v63 = vsel %vm638_vm7, %v1037_v21, %v662_v51  ;;  %v670_v3 = vmul.f32 5.0, %v1105_v42  ;;  %vm646_vm10 = vcmp.ge.f32.partialorder %v1105_v42, 0.0 }
  0x15   :  { %108 = vmatmul.mubr.f32.gmra.mrb[2].mxu0 %v1000_v9  ;;  %282 = vmatprep.subr.mxu1 %v1133_v54  ;;  %v758_v10 = vmul.f32 %v732_v52, %v732_v52  ;;  %v669_v14 = vmul.f32 5.0, %v1146_v58  ;;  %v666_v17 = vmul.f32 5.0, %v1042_v22  ;;  %v665_v18 = vmul.f32 5.0, %v1070_v29 }
  0x16   :  { %112 = vmatprep.mubr.f32.mxu0 %v1023_v16  ;;  %v757_v11 = vmul.f32 %v730_v53, %v730_v53  ;;  %v685_v20 = vsel %vm637_vm9, %v1065_v28, %v661_v57  ;;  %vm645_vm11 = vcmp.ge.f32.partialorder %v1146_v58, 0.0  ;;  %v695_v23 = vsel %vm647_vm8, %v1011_v12, %v671_v60 }
  0x17   :  { %268 = vmatmul.mubr.f32.gmra.mrb[2].mxu1 %v1016_v13  ;;  %vm642_vm12 = vcmp.ge.f32.partialorder %v1042_v22, 0.0  ;;  %vm641_vm13 = vcmp.ge.f32.partialorder %v1070_v29, 0.0  ;;  %v737_v32 = vmul.f32 %v1114_v47, %v687_v59  ;;  %vm392_vm14 = vcmask 1041408  }
  0x18   :  { %272 = vmatprep.mubr.f32.mxu1 %v1031_v19  ;;  %v1168_v7 = vpop.eup %889  ;;  %v742_v33 = vmul.f32 %v1107_v43, %v692_v61  ;;  %v694_v36 = vsel %vm646_vm10, %v1105_v42, %v670_v3  ;;  %v781_v37 = vadd.f32 %v758_v10, %v757_v11  ;;  %v741_v38 = vmul.f32 %v1114_v47, %v691_v62 }
  0x19   :  { %113 = vmatmul.mubr.f32.gmra.mrb[4].mxu0 %v1060_v27  ;;  %v736_v26 = vmul.f32 %v1168_v7, %v686_v63  ;;  %v1193_v31 = vpop.eup %891  ;;  %v693_v40 = vsel %vm645_vm11, %v1146_v58, %v669_v14  ;;  %v738_v41 = vmul.f32 %v1107_v43, %v688_v55  ;;  %v1209_v44 = vmul.f32 5.0, %v984_v5 }
  0x1a   :  { %123 = vmatpush1.xpose.msra.mxu0 %v1146_v58  ;;  %182 = vmatprep.mubr.f32.mxu0 %v1037_v21  ;;  %v734_v39 = vmul.f32 %v1193_v31, %v685_v20  ;;  %v690_v45 = vsel %vm642_vm12, %v1042_v22, %v666_v17  ;;  %v689_v46 = vsel %vm641_vm13, %v1070_v29, %v665_v18  ;;  %v673_v51 = vmul.f32 5.0, %v1085_v34 }
  0x1b   :  { %273 = vmatmul.mubr.f32.gmra.mrb[4].mxu1 %v1076_v30  ;;  %v746_v48 = vmul.f32 %v1107_v43, %v696_v56  ;;  %v760_v49 = vmul.f32 %v736_v26, %v736_v26  ;;  %v745_v52 = vmul.f32 %v1114_v47, %v695_v23  ;;  %v766_v53 = vmul.f32 %v742_v33, %v742_v33 }
  0x1c   :  { %283 = vmatpush1.xpose.msra.mxu1 %v1176_v15  ;;  %342 = vmatprep.mubr.f32.mxu1 %v1049_v24  ;;  %v759_v50 = vmul.f32 %v734_v39, %v734_v39  ;;  %v744_v55 = vmul.f32 %v1168_v7, %v694_v36  ;;  %v743_v57 = vmul.f32 %v1193_v31, %v693_v40  ;;  %v1228_v62 = vmul.f32 5.0, %v1016_v13 }
  0x1d   :  { %183 = vmatmul.mubr.f32.vlgmr.msra.gmra.mrb[0].mxu0 %v1065_v28  ;;  %v761_v59 = vmul.f32 %v737_v32, %v737_v32  ;;  %v765_v60 = vmul.f32 %v741_v38, %v741_v38  ;;  %v739_v56 = vmul.f32 %v1193_v31, %v689_v46  ;;  %v740_v63 = vmul.f32 %v1168_v7, %v690_v45 }
  0x1e   :  { %187 = vmatprep.mubr.f32.mxu0 %v1042_v22  ;;  %v782_v61 = vadd.f32 %v781_v37, %v759_v50  ;;  %v674_v3 = vmul.f32 5.0, %v1049_v24  ;;  %vm649_vm15 = vcmp.ge.f32.partialorder %v1085_v34, 0.0  ;;  %v762_v10 = vmul.f32 %v738_v41, %v738_v41 }
  0x1f   :  { %343 = vmatmul.mubr.f32.vlgmr.msra.gmra.mrb[0].mxu1 %v1085_v34  ;;  %v1234_v11 = vmul.f32 %v746_v48, %v746_v48  ;;  %vm650_vm0 = vcmp.ge.f32.partialorder %v1049_v24, 0.0  ;;  %v1239_v17 = vmul.f32 %v745_v52, %v745_v52  ;;  %v790_v18 = vsel %vm392_vm14, %v766_v53, 0.0 }
  0x20   :  { %347 = vmatprep.mubr.f32.mxu1 %v1054_v25  ;;  %v783_v14 = vadd.f32 %v782_v61, %v760_v49  ;;  %v768_v20 = vmul.f32 %v744_v55, %v744_v55  ;;  %v767_v23 = vmul.f32 %v743_v57, %v743_v57  ;;  %v788_v26 = vsel %vm392_vm14, %v765_v60, 0.0 }
  0x21   :  { %188 = vmatmul.mubr.f32.gmra.mrb[2].mxu0 %v1070_v29  ;;  %v763_v32 = vmul.f32 %v739_v56, %v739_v56  ;;  %v697_v36 = vsel %vm649_vm15, %v1085_v34, %v673_v51  ;;  %v764_v37 = vmul.f32 %v740_v63, %v740_v63  ;;  %v1247_v38 = vmul.f32 5.0, %v1090_v35 }
  0x22   :  { %192 = vmatprep.mubr.f32.mxu0 %v1105_v42  ;;  %v784_v33 = vadd.f32 %v783_v14, %v761_v59  ;;  %v1250_v39 = vmul.f32 5.0, %v1054_v25  ;;  %v1253_v40 = vmul.f32 5.0, %v1076_v30  ;;  %vm651_vm1 = vcmp.ge.f32.partialorder %v1016_v13, 0.0 }
  0x23   :  { %348 = vmatmul.mubr.f32.gmra.mrb[2].mxu1 %v1090_v35  ;;  %v362_v45 = vmul.f32 %v1000_v9, %v1000_v9  ;;  %v363_v46 = vmul.f32 %v972_v1, %v972_v1  ;;  %v364_v48 = vmul.f32 %v1070_v29, %v1070_v29  ;;  %v794_v49 = vsel %vm392_vm14, %v768_v20, 0.0 }
  0x24   :  { %352 = vmatprep.mubr.f32.mxu1 %v1133_v54  ;;  %v785_v41 = vadd.f32 %v784_v33, %v762_v10  ;;  %v792_v50 = vsel %vm392_vm14, %v767_v23, 0.0  ;;  %v698_v51 = vsel %vm650_vm0, %v1049_v24, %v674_v3  ;;  %v747_v52 = vmul.f32 %v1193_v31, %v697_v36 }
  0x25   :  { %193 = vmatmul.mubr.f32.gmra.mrb[4].mxu0 %v1146_v58  ;;  %vm652_vm2 = vcmp.ge.f32.partialorder %v984_v5, 0.0  ;;  %v365_v9 = vmul.f32 %v1042_v22, %v1042_v22  ;;  %v387_v1 = vadd.f32 %v363_v46, %v362_v45  ;;  %v358_v29 = vmul.f32 %v995_v8, %v995_v8 }
  0x26   :  { %v786_v53 = vadd.f32 %v785_v41, %v763_v32  ;;  %v359_v55 = vmul.f32 %v967_v0, %v967_v0  ;;  %v360_v57 = vmul.f32 %v1065_v28, %v1065_v28  ;;  %v361_v59 = vmul.f32 %v1037_v21, %v1037_v21 }
  0x27   :  { %353 = vmatmul.mubr.f32.gmra.mrb[4].mxu1 %v1176_v15  ;;  %v370_v60 = vmul.f32 %v1011_v12, %v1011_v12  ;;  %vm653_vm3 = vcmp.ge.f32.partialorder %v1090_v35, 0.0  ;;  %v388_v22 = vadd.f32 %v387_v1, %v364_v48  ;;  %v371_v61 = vmul.f32 %v979_v4, %v979_v4 }
  0x28   :  { %v787_v56 = vadd.f32 %v786_v53, %v764_v37  ;;  %v372_v8 = vmul.f32 %v1085_v34, %v1085_v34  ;;  %vm655_vm4 = vcmp.ge.f32.partialorder %v1076_v30, 0.0  ;;  %v382_v0 = vadd.f32 %v359_v55, %v358_v29 }
  0x29   :  { %v373_v28 = vmul.f32 %v1049_v24, %v1049_v24  ;;  %v374_v21 = vmul.f32 %v1016_v13, %v1016_v13  ;;  %v375_v12 = vmul.f32 %v984_v5, %v984_v5  ;;  %vm654_vm5 = vcmp.ge.f32.partialorder %v1054_v25, 0.0 }
  0x2a   :  { %v789_v63 = vadd.f32 %v788_v26, %v787_v56  ;;  %v389_v3 = vadd.f32 %v388_v22, %v365_v9  ;;  %v402_v4 = vadd.f32 %v371_v61, %v370_v60  ;;  %v376_v34 = vmul.f32 %v1090_v35, %v1090_v35 }
  0x2b   :  { %vm656_vm6 = vcmp.ge.f32.partialorder %v1031_v19, 0.0  ;;  %v383_v10 = vadd.f32 %v382_v0, %v360_v57  ;;  %v377_v24 = vmul.f32 %v1054_v25, %v1054_v25  ;;  %v407_v14 = vadd.f32 %v375_v12, %v374_v21 }
  0x2c   :  { %v366_v20 = vmul.f32 %v1060_v27, %v1060_v27  ;;  %v791_v23 = vadd.f32 %v790_v18, %v789_v63  ;;  %390 = vadd.xlane.f32.xlu1 %v389_v3  ;;  %v403_v26 = vadd.f32 %v402_v4, %v372_v8  ;;  %v367_v32 = vmul.f32 %v1023_v16, %v1023_v16 }
  0x2d   :  { %v368_v33 = vmul.f32 %v1146_v58, %v1146_v58  ;;  %v1306_v36 = vadd.f32 %v383_v10, %v361_v59  ;;  %v408_v37 = vadd.f32 %v407_v14, %v376_v34  ;;  %v369_v41 = vmul.f32 %v1105_v42, %v1105_v42 }
  0x2e   :  { %v393_v45 = vsel %vm392_vm14, %v366_v20, 0.0  ;;  %v793_v46 = vadd.f32 %v792_v50, %v791_v23  ;;  %v404_v48 = vadd.f32 %v403_v26, %v373_v28  ;;  %v394_v27 = vsel %vm392_vm14, %v367_v32, 0.0 }
  0x2f   :  { %v396_v18 = vsel %vm392_vm14, %v368_v33, 0.0  ;;  %v699_v16 = vsel %vm651_vm1, %v1016_v13, %v1228_v62  ;;  %v1317_v58 = vadd.f32 %v408_v37, %v377_v24  ;;  %v395_v53 = vadd.f32 %v394_v27, %v393_v45 }
  0x30   :  { %v378_v9 = vmul.f32 %v1076_v30, %v1076_v30  ;;  %v748_v42 = vmul.f32 %v1168_v7, %v698_v51  ;;  %v795_v1 = vadd.f32 %v794_v49, %v793_v46  ;;  %405 = vadd.xlane.f32.xlu1 %v404_v48  ;;  %v398_v50 = vsel %vm392_vm14, %v369_v41, 0.0 }
  0x31   :  { %v379_v29 = vmul.f32 %v1031_v19, %v1031_v19  ;;  %v680_v55 = vmul.f32 5.0, %v1031_v19  ;;  %v700_v13 = vsel %vm652_vm2, %v984_v5, %v1209_v44  ;;  %v397_v62 = vadd.f32 %v396_v18, %v395_v53 }
  0x32   :  { %v412_v57 = vsel %vm392_vm14, %v378_v9, 0.0  ;;  %v749_v59 = vmul.f32 %v1114_v47, %v699_v16  ;;  %v771_v51 = vmul.f32 %v747_v52, %v747_v52  ;;  %v796_v49 = vadd.f32 %v795_v1, %v1239_v17 }
  0x33   :  { %v413_v60 = vsel %vm392_vm14, %v379_v29, 0.0  ;;  %v681_v56 = vmul.f32 5.0, %v1176_v15  ;;  %v701_v22 = vsel %vm653_vm3, %v1090_v35, %v1247_v38  ;;  %v399_v61 = vadd.f32 %v398_v50, %v397_v62 }
  0x34   :  { %v414_v8 = vadd.f32 %v413_v60, %v412_v57  ;;  %v703_v5 = vsel %vm655_vm4, %v1076_v30, %v1253_v40  ;;  %v750_v44 = vmul.f32 %v1107_v43, %v700_v13  ;;  %v772_v52 = vmul.f32 %v748_v42, %v748_v42 }
  0x35   :  { %v797_v17 = vadd.f32 %v796_v49, %v1234_v11  ;;  %vm657_vm7 = vcmp.ge.f32.partialorder %v1176_v15, 0.0  ;;  %v682_v0 = vmul.f32 5.0, %v1133_v54  ;;  %v702_v35 = vsel %vm654_vm5, %v1054_v25, %v1250_v39  ;;  %400 = vadd.xlane.f32.xlu1 %v399_v61 }
  0x36   :  { %v704_v38 = vsel %vm656_vm6, %v1031_v19, %v680_v55  ;;  %v751_v30 = vmul.f32 %v1193_v31, %v701_v22  ;;  %v773_v40 = vmul.f32 %v749_v59, %v749_v59  ;;  %vm658_vm8 = vcmp.ge.f32.partialorder %v1133_v54, 0.0 }
  0x37   :  { %v798_v28 = vadd.f32 %v797_v17, %v771_v51  ;;  %v753_v11 = vmul.f32 %v1114_v47, %v703_v5  ;;  %v705_v21 = vsel %vm657_vm7, %v1176_v15, %v681_v56  ;;  %v752_v12 = vmul.f32 %v1168_v7, %v702_v35 }
  0x38   :  { %v774_v63 = vmul.f32 %v750_v44, %v750_v44  ;;  %v754_v25 = vmul.f32 %v1107_v43, %v704_v38  ;;  %v706_v39 = vsel %vm658_vm8, %v1133_v54, %v682_v0  ;;  %v775_v4 = vmul.f32 %v751_v30, %v751_v30 }
  0x39   :  { %v799_v3 = vadd.f32 %v798_v28, %v772_v52  ;;  %v755_v34 = vmul.f32 %v1193_v31, %v705_v21  ;;  %v777_v10 = vmul.f32 %v753_v11, %v753_v11  ;;  %v776_v24 = vmul.f32 %v752_v12, %v752_v12 }
  0x3a   :  { %v756_v20 = vmul.f32 %v1168_v7, %v706_v39  ;;  %v778_v47 = vmul.f32 %v754_v25, %v754_v25  ;;  %v380_v27 = vmul.f32 %v1176_v15, %v1176_v15  ;;  %v381_v18 = vmul.f32 %v1133_v54, %v1133_v54 }
  0x3b   :  { %v800_v19 = vadd.f32 %v799_v3, %v773_v40  ;;  %v779_v26 = vmul.f32 %v755_v34, %v755_v34  ;;  %v804_v32 = vsel %vm392_vm14, %v777_v10, 0.0  ;;  %v428_v50 = vand.u32 127, %v427_v2 }
  0x3c   :  { %v780_v37 = vmul.f32 %v756_v20, %v756_v20  ;;  %v806_v43 = vsel %vm392_vm14, %v778_v47, 0.0  ;;  %v415_v16 = vsel %vm392_vm14, %v380_v27, 0.0  ;;  %v417_v9 = vsel %vm392_vm14, %v381_v18, 0.0 }
  0x3d   :  { %v801_v14 = vadd.f32 %v800_v19, %v774_v63  ;;  %v808_v45 = vsel %vm392_vm14, %v779_v26, 0.0  ;;  %v416_v53 = vadd.f32 %v415_v16, %v414_v8  ;;  %v433_v13 = vadd.s32 4294967288, %v428_v50 }
  0x3e   :  { %v810_v31 = vsel %vm392_vm14, %v780_v37, 0.0  ;;  %v440_v51 = vadd.s32 4294967280, %v428_v50  ;;  %v431_v49 = vsub.s32 %v428_v50, %v988_v6  ;;  %vm438_vm9 = vcmask 130112  }
  0x3f   :  { %v802_v23 = vadd.f32 %v801_v14, %v775_v4  ;;  %v418_v42 = vadd.f32 %v417_v9, %v416_v53  ;;  %vm445_vm10 = vcmask 195712   ;;  %vm627_vm7 = vcmask 146432  }
  0x40   :  { %v443_v22 = vsub.s32 %v440_v51, %v988_v6 }
  0x41   :  { %v803_v33 = vadd.f32 %v802_v23, %v776_v24 }
  0x43   :  { %v805_v41 = vadd.f32 %v804_v32, %v803_v33 }
  0x45   :  { %v807_v46 = vadd.f32 %v806_v43, %v805_v41 }
  0x47   :  { %v809_v48 = vadd.f32 %v808_v45, %v807_v46 }
  0x49   :  { %v811_v7 = vadd.f32 %v810_v31, %v809_v48 }
  0x4b   :  { %812 = vadd.xlane.f32.xlu0 %v811_v7 }
  0x4f   :  { %385 = vadd.xlane.f32.xlu0 %v1306_v36  ;;  %v436_v36 = vsub.s32 %v433_v13, %v988_v6 }
  0x53   :  { %410 = vadd.xlane.f32.xlu0 %v1317_v58 }
  0x57   :  { %419 = vadd.xlane.f32.xlu0 %v418_v42 }
  0xb9   :  { %v391_v15 = vpop.xlane.xlu1 %390 }
  0xba   :  { %v437_v61 = vrot.slane %v391_v15, %v436_v36 }
  0xbd   :  { %v406_v57 = vpop.xlane.xlu1 %405 }
  0xbe   :  { %v450_v5 = vrot.slane %v406_v57, %v431_v49 }
  0xc2   :  { %v401_v8 = vpop.xlane.xlu1 %400 }
  0xc3   :  { %v444_v17 = vrot.slane %v401_v8, %v443_v22 }
  0xd8   :  { %v813_v1 = vpop.xlane.xlu0 %812 }
  0xd9   :  { %v814_v29 = vrot.slane %v813_v1, 4 }
  0xdb   :  { %v815_v55 = vadd.f32 %v814_v29, %v813_v1 }
  0xdc   :  { %v386_v62 = vpop.xlane.xlu0 %385 }
  0xdd   :  { %v816_v54 = vrot.slane %v815_v55, 2  ;;  %v432_v2 = vrot.slane %v386_v62, %v431_v49 }
  0xdf   :  { %v817_v59 = vadd.f32 %v816_v54, %v815_v55  ;;  %v439_v0 = vsel %vm438_vm9, %v437_v61, %v432_v2 }
  0xe0   :  { %v411_v60 = vpop.xlane.xlu0 %410  ;;  %v446_v30 = vsel %vm445_vm10, %v444_v17, %v439_v0 }
  0xe1   :  { %v818_v58 = vrot.slane %v817_v59, 1  ;;  %v454_v44 = vrot.slane %v411_v60, %v436_v36  ;;  %v483_v28 = vadd.f32 %v446_v30, %v386_v62  ;;  %v484_v24 = vadd.f32 %v446_v30, %v391_v15 }
  0xe2   :  { %v485_v50 = vadd.f32 %v446_v30, %v401_v8 }
  0xe3   :  { %v819_v56 = vadd.f32 %v818_v58, %v817_v59  ;;  %v455_v38 = vsel %vm438_vm9, %v454_v44, %v450_v5 }
  0xe4   :  { %v420_v52 = vpop.xlane.xlu0 %419 }
  0xe5   :  { %880 = vpush %v819_v56  ;;  %v459_v35 = vrot.slane %v420_v52, %v443_v22 }
  0xe7   :  { %v460_v40 = vsel %vm445_vm10, %v459_v35, %v455_v38 }
  0xe8   :  { %v486_v21 = vadd.f32 %v460_v40, %v406_v57  ;;  %v487_v26 = vadd.f32 %v460_v40, %v411_v60  ;;  %v488_v36 = vadd.f32 %v460_v40, %v420_v52 }
  0xf0   :  { %v184_v11 = vpop.f32.mrb[0].mxu0 }
  0xf1   :  { %v489_v12 = vmul.f32 2.0, %v184_v11  ;;  %v186_v63 = vpop.f32.mrb[1].mxu0 }
  0xf2   :  { %v344_v6 = vpop.f32.mrb[0].mxu1 }
  0xf3   :  { %v492_v3 = vmul.f32 2.0, %v344_v6  ;;  %v346_v25 = vpop.f32.mrb[1].mxu1  ;;  %v495_v39 = vsub.f32 %v483_v28, %v489_v12  ;;  %v555_v4 = vadd.f32 %v489_v12, %v483_v28 }
  0xf4   :  { %v189_v10 = vpop.f32.mrb[2].mxu0 }
  0xf5   :  { %v498_v19 = vsub.f32 %v486_v21, %v492_v3  ;;  %v558_v34 = vadd.f32 %v492_v3, %v486_v21  ;;  %v501_v14 = vmax.f32 %v495_v39, 0.0  ;;  %v561_v20 = vmax.f32 %v555_v4, 0.0  ;;  %v191_v32 = vpop.f32.mrb[3].mxu0 }
  0xf6   :  { %v490_v47 = vmul.f32 2.0, %v189_v10  ;;  %v349_v23 = vpop.f32.mrb[2].mxu1 }
  0xf7   :  { %v564_v33 = vmax.f32 %v558_v34, 0.0  ;;  %v493_v37 = vmul.f32 2.0, %v349_v23  ;;  %v351_v43 = vpop.f32.mrb[3].mxu1  ;;  %v567_v41 = vadd.f32 1e-09, %v561_v20  ;;  %v504_v45 = vmax.f32 %v498_v19, 0.0 }
  0xf8   :  { %v194_v31 = vpop.f32.mrb[4].mxu0  ;;  %v1379_v48 = vadd.f32 1e-09, %v501_v14  ;;  %v496_v27 = vsub.f32 %v484_v24, %v490_v47  ;;  %v556_v7 = vadd.f32 %v490_v47, %v484_v24 }
  0xf9   :  { %v570_v46 = vadd.f32 1e-09, %v564_v33  ;;  %v559_v18 = vadd.f32 %v493_v37, %v487_v26  ;;  %v196_v53 = vpop.f32.mrb[5].mxu0  ;;  %893 = vrsqrt.f32 %v567_v41  ;;  %v1381_v42 = vadd.f32 1e-09, %v504_v45 }
  0xfa   :  { %v354_v16 = vpop.f32.mrb[4].mxu1  ;;  %v499_v1 = vsub.f32 %v487_v26, %v493_v37  ;;  %v502_v15 = vmax.f32 %v496_v27, 0.0  ;;  %v562_v29 = vmax.f32 %v556_v7, 0.0  ;;  %v491_v13 = vmul.f32 2.0, %v194_v31 }
  0xfb   :  { %v356_v9 = vpop.f32.mrb[5].mxu1  ;;  %895 = vrsqrt.f32 %v570_v46  ;;  %v565_v55 = vmax.f32 %v559_v18, 0.0  ;;  %vm575_vm11 = vcmp.eq.f32.partialorder %v567_v41, inf  ;;  %vm577_vm12 = vcmp.eq.f32.partialorder %v567_v41, 0.0 }
  0xfc   :  { %897 = vrsqrt.f32 %v1379_v48  ;;  %v1385_v62 = vadd.f32 1e-09, %v562_v29  ;;  %v505_v54 = vmax.f32 %v499_v1, 0.0  ;;  %v1389_v59 = vadd.f32 1e-09, %v502_v15 }
  0xfd   :  { %899 = vrsqrt.f32 %v1381_v42  ;;  %v1387_v57 = vadd.f32 1e-09, %v565_v55  ;;  %v557_v51 = vadd.f32 %v491_v13, %v485_v50  ;;  %v497_v60 = vsub.f32 %v485_v50, %v491_v13 }
  0xfe   :  { %901 = vrsqrt.f32 %v1385_v62  ;;  %v1392_v49 = vadd.f32 1e-09, %v505_v54  ;;  %v578_v56 = vand.u32 2147483648, %v567_v41  ;;  %v494_v2 = vmul.f32 2.0, %v354_v16 }
  0xff   :  { %903 = vrsqrt.f32 %v1387_v57  ;;  %v563_v61 = vmax.f32 %v557_v51, 0.0  ;;  %vm596_vm13 = vcmp.eq.f32.partialorder %v570_v46, inf  ;;  %vm598_vm14 = vcmp.eq.f32.partialorder %v570_v46, 0.0 }
 0x100   :  { %905 = vrsqrt.f32 %v1389_v59  ;;  %v599_v5 = vand.u32 2147483648, %v570_v46  ;;  %v503_v0 = vmax.f32 %v497_v60, 0.0  ;;  %vm515_vm15 = vcmp.eq.f32.partialorder %v1379_v48, inf }
 0x101   :  { %907 = vrsqrt.f32 %v1392_v49  ;;  %v1399_v38 = vadd.f32 1e-09, %v563_v61  ;;  %v500_v28 = vsub.f32 %v488_v36, %v494_v2  ;;  %v560_v11 = vadd.f32 %v494_v2, %v488_v36 }
 0x102   :  { %vm517_vm0 = vcmp.eq.f32.partialorder %v1379_v48, 0.0  ;;  %v518_v12 = vand.u32 2147483648, %v1379_v48  ;;  %vm536_vm1 = vcmp.eq.f32.partialorder %v1381_v42, inf  ;;  %v539_v63 = vand.u32 2147483648, %v1381_v42 }
 0x103   :  { %v894_v58 = vpop.eup %893  ;;  %v1407_v3 = vadd.f32 1e-09, %v503_v0  ;;  %vm582_vm2 = vcmp.eq.f32.partialorder %v1385_v62, inf  ;;  %v585_v4 = vand.u32 2147483648, %v1385_v62  ;;  %vm584_vm3 = vcmp.eq.f32.partialorder %v1385_v62, 0.0 }
 0x104   :  { %v574_v22 = vmul.f32 %v894_v58, %v567_v41  ;;  %v506_v34 = vmax.f32 %v500_v28, 0.0  ;;  %v566_v10 = vmax.f32 %v560_v11, 0.0  ;;  %vm603_vm4 = vcmp.eq.f32.partialorder %v1387_v57, inf }
 0x105   :  { %v896_v8 = vpop.eup %895  ;;  %vm605_vm5 = vcmp.eq.f32.partialorder %v1387_v57, 0.0  ;;  %v606_v20 = vand.u32 2147483648, %v1387_v57  ;;  %vm538_vm6 = vcmp.eq.f32.partialorder %v1381_v42, 0.0  ;;  %vm522_vm8 = vcmp.eq.f32.partialorder %v1389_v59, inf }
 0x106   :  { %v898_v44 = vpop.eup %897  ;;  %v576_v52 = vsel %vm575_vm11, %v567_v41, %v574_v22  ;;  %v595_v17 = vmul.f32 %v896_v8, %v570_v46  ;;  %v1424_v32 = vadd.f32 1e-09, %v566_v10  ;;  %vm524_vm9 = vcmp.eq.f32.partialorder %v1389_v59, 0.0 }
 0x107   :  { %v579_v35 = vsel %vm577_vm12, %v578_v56, %v576_v52  ;;  %v900_v30 = vpop.eup %899  ;;  %v514_v21 = vmul.f32 %v898_v44, %v1379_v48  ;;  %v525_v9 = vand.u32 2147483648, %v1389_v59  ;;  %vm543_vm10 = vcmp.eq.f32.partialorder %v1392_v49, inf }
 0x108   :  { %909 = vrcp.f32 %v579_v35  ;;  %v597_v40 = vsel %vm596_vm13, %v570_v46, %v595_v17  ;;  %v902_v25 = vpop.eup %901  ;;  %v535_v39 = vmul.f32 %v900_v30, %v1381_v42  ;;  %v1433_v46 = vadd.f32 1e-09, %v506_v34 }
 0x109   :  { %v600_v6 = vsel %vm598_vm14, %v599_v5, %v597_v40  ;;  %v581_v19 = vmul.f32 %v902_v25, %v1385_v62  ;;  %v904_v24 = vpop.eup %903  ;;  %v516_v14 = vsel %vm515_vm15, %v1379_v48, %v514_v21  ;;  %vm589_vm11 = vcmp.eq.f32.partialorder %v1399_v38, inf }
 0x10a   :  { %911 = vrcp.f32 %v600_v6  ;;  %v906_v47 = vpop.eup %905  ;;  %v602_v26 = vmul.f32 %v904_v24, %v1387_v57  ;;  %v537_v33 = vsel %vm536_vm1, %v1381_v42, %v535_v39  ;;  %v519_v41 = vsel %vm517_vm0, %v518_v12, %v516_v14 }
 0x10b   :  { %913 = vrsqrt.f32 %v1399_v38  ;;  %v583_v23 = vsel %vm582_vm2, %v1385_v62, %v581_v19  ;;  %v908_v43 = vpop.eup %907  ;;  %v521_v31 = vmul.f32 %v906_v47, %v1389_v59  ;;  %v540_v18 = vsel %vm538_vm6, %v539_v63, %v537_v33 }
 0x10c   :  { %915 = vrsqrt.f32 %v1407_v3  ;;  %v586_v37 = vsel %vm584_vm3, %v585_v4, %v583_v23  ;;  %v604_v45 = vsel %vm603_vm4, %v1387_v57, %v602_v26  ;;  %v542_v16 = vmul.f32 %v908_v43, %v1392_v49 }
 0x10d   :  { %917 = vrcp.f32 %v586_v37  ;;  %v607_v27 = vsel %vm605_vm5, %v606_v20, %v604_v45  ;;  %v523_v50 = vsel %vm522_vm8, %v1389_v59, %v521_v31  ;;  %v592_v15 = vand.u32 2147483648, %v1399_v38 }
 0x10e   :  { %919 = vrsqrt.f32 %v1424_v32  ;;  %v546_v29 = vand.u32 2147483648, %v1392_v49  ;;  %vm591_vm12 = vcmp.eq.f32.partialorder %v1399_v38, 0.0  ;;  %v544_v13 = vsel %vm543_vm10, %v1392_v49, %v542_v16 }
 0x10f   :  { %921 = vrcp.f32 %v607_v27  ;;  %vm545_vm13 = vcmp.eq.f32.partialorder %v1392_v49, 0.0  ;;  %v526_v57 = vsel %vm524_vm9, %v525_v9, %v523_v50  ;;  %vm610_vm14 = vcmp.eq.f32.partialorder %v1424_v32, inf }
 0x110   :  { %923 = vrsqrt.f32 %v1433_v46  ;;  %v547_v58 = vsel %vm545_vm13, %v546_v29, %v544_v13  ;;  %v613_v49 = vand.u32 2147483648, %v1424_v32  ;;  %vm529_vm15 = vcmp.eq.f32.partialorder %v1407_v3, inf }
 0x111   :  { %vm612_vm0 = vcmp.eq.f32.partialorder %v1424_v32, 0.0  ;;  %v532_v44 = vand.u32 2147483648, %v1407_v3  ;;  %vm531_vm1 = vcmp.eq.f32.partialorder %v1407_v3, 0.0  ;;  %vm550_vm2 = vcmp.eq.f32.partialorder %v1433_v46, inf }
 0x112   :  { %v910_v7 = vpop.eup %909  ;;  %vm630_vm3 = vcmask 140288   ;;  %vm552_vm4 = vcmp.eq.f32.partialorder %v1433_v46, 0.0  ;;  %v553_v11 = vand.u32 2147483648, %v1433_v46 }
 0x113   :  { %v616_v48 = vmul.f32 %v910_v7, %v519_v41 }
 0x114   :  { %v912_v53 = vpop.eup %911 }
 0x115   :  { %v914_v42 = vpop.eup %913  ;;  %628 = vst.msk [vmem:[%s1509_s2] sm:$0xff] %vm627_vm7, %v616_v48  ;;  %v622_v1 = vmul.f32 %v912_v53, %v540_v18 }
 0x116   :  { %v588_v55 = vmul.f32 %v914_v42, %v1399_v38  ;;  %s881_s7 = spop %880  ;;  %v916_v54 = vpop.eup %915 }
 0x117   :  { %632 = vst.msk [vmem:[%s1509_s2 + $0x18] sm:$0xff] %vm627_vm7, %v622_v1  ;;  %v821_v62 = vstv %s881_s7  ;;  %v918_v60 = vpop.eup %917  ;;  %v528_v61 = vmul.f32 %v916_v54, %v1407_v3 }
 0x118   :  { %v590_v51 = vsel %vm589_vm11, %v1399_v38, %v588_v55  ;;  %925 = vrsqrt.f32 %v821_v62  ;;  %v920_v56 = vpop.eup %919  ;;  %v618_v22 = vmul.f32 %v918_v60, %v526_v57  ;;  %vm824_vm5 = vcmp.eq.f32.partialorder %v821_v62, inf }
 0x119   :  { %v593_v36 = vsel %vm591_vm12, %v592_v15, %v590_v51  ;;  %v922_v2 = vpop.eup %921  ;;  %v609_v59 = vmul.f32 %v920_v56, %v1424_v32  ;;  %v530_v17 = vsel %vm529_vm15, %v1407_v3, %v528_v61  ;;  %v827_v21 = vand.u32 2147483648, %v821_v62 }
 0x11a   :  { %927 = vrcp.f32 %v593_v36  ;;  %629 = vst.msk [vmem:[%s1509_s2 + $0x8] sm:$0xff] %vm627_vm7, %v618_v22  ;;  %v624_v8 = vmul.f32 %v922_v2, %v547_v58  ;;  %v924_v5 = vpop.eup %923  ;;  %v533_v30 = vsel %vm531_vm1, %v532_v44, %v530_v17  ;;  %vm826_vm6 = vcmp.eq.f32.partialorder %v821_v62, 0.0 }
 0x11b   :  { %v611_v52 = vsel %vm610_vm14, %v1424_v32, %v609_v59  ;;  %v549_v35 = vmul.f32 %v924_v5, %v1433_v46 }
 0x11c   :  { %633 = vst.msk [vmem:[%s1509_s2 + $0x20] sm:$0xff] %vm627_vm7, %v624_v8  ;;  %v614_v0 = vsel %vm612_vm0, %v613_v49, %v611_v52 }
 0x11d   :  { %929 = vrcp.f32 %v614_v0  ;;  %v551_v6 = vsel %vm550_vm2, %v1433_v46, %v549_v35 }
 0x11e   :  { %v554_v25 = vsel %vm552_vm4, %v553_v11, %v551_v6 }
 0x122   :  { %v926_v38 = vpop.eup %925 }
 0x123   :  { %v823_v40 = vmul.f32 %v926_v38, %v821_v62 }
 0x124   :  { %v928_v28 = vpop.eup %927 }
 0x125   :  { %v620_v12 = vmul.f32 %v928_v28, %v533_v30  ;;  %v825_v63 = vsel %vm824_vm5, %v821_v62, %v823_v40 }
 0x126   :  { %v828_v3 = vsel %vm826_vm6, %v827_v21, %v825_v63 }
 0x127   :  { %631 = vst.msk [vmem:[%s1509_s2 + $0x10] sm:$0x3] %vm630_vm3, %v620_v12  ;;  %v930_v39 = vpop.eup %929 }
 0x128   :  { %882 = vpush %v828_v3  ;;  %v626_v4 = vmul.f32 %v930_v39, %v554_v25 }
 0x12a   :  { %634 = vst.msk [vmem:[%s1509_s2 + $0x28] sm:$0x3] %vm630_vm3, %v626_v4 }
 0x159   :  { %s883_s18 = spop %882 }
 0x15a   :  { %s851_s19 = sadd.f32 -96.0, %s883_s18 }
 0x15c   :  { %s831_s20 = sand.u32 2147483647, %s851_s19 }
 0x15d   :  { %833 = sst [smem:[#allocation2]] %s831_s20 }
 0x15e   :  { %940 = shalt.err (!%p937_p2)
}
 0x15f   :  { %s943_s28 = smov [#allocation2]  }
 0x160   :  { %843 = dma.smem_to_hbm %s943_s28, 16, %s1510_s3, [#allocation3]  }
 0x161   :  { %941 = dma.done.wait [#allocation3], 16  }
 0x162   :  { %942 = vsyncadd [#allocation3], 4294967280 }
 0x163   :  { %849 = sfence }
 0x164   :  { %850 = vsyncpa [#allocation3], 1 }

</bundles_post_ra>
